<compile_context>
chip_gen: v7x
topology: tpu7x:2x2x1
jax: 0.10.0
libtpu: 0.0.40
codegen_flags: <defaults>
</compile_context>

<pallas_src>
import functools

import jax
import jax.numpy as jnp
from jax import lax
from jax.experimental import pallas as pl
from jax.experimental.pallas import tpu as pltpu

LANE = 128


def _round_up(v, m):
    return (v + m - 1) // m * m


def _tree_sum(parts):
    # Log-depth pairwise reduction: keeps the MXU partial results independent.
    while len(parts) > 1:
        nxt = []
        for i in range(0, len(parts) - 1, 2):
            nxt.append(parts[i] + parts[i + 1])
        if len(parts) % 2 == 1:
            nxt.append(parts[-1])
        parts = nxt
    return parts[0]


# ---------------------------------------------------------------------------
# Fused Pallas kernel (B_tile batch elements per grid step)
# ---------------------------------------------------------------------------
def fused_nn_baseline_kernel(p_ref, wk_ref, bk_ref, w1_ref, b1_ref, w2_ref,
                             b2_ref, o_ref, *, b_tile, hw2):
    # p_ref : (B_tile*4*HW2, Kp)    im2col patches (rows: batch, pool-slot, pixel)
    # wk_ref: (Kp, Cp)              conv weight, K and out-channels zero padded
    # bk_ref: (1, Cp)               conv bias (padded)
    # w1_ref: (C, HW2, Nh_pad)      fc1 weight per real conv channel (PyTorch order)
    # b1_ref: (1, Nh_pad)
    # w2_ref: (Nh_pad, Ncls_pad)
    # b2_ref: (1, Ncls_pad)
    # o_ref : (1, B_tile, Ncls_pad) padded logits for this step's batch slice
    n_ch = w1_ref.shape[0]

    # Conv3x3 as ONE MXU matmul over all batch elements and all four 2x2
    # pool-window slots: (B_tile*4*HW2, Kp) @ (Kp, Cp).
    z = jnp.dot(p_ref[...], wk_ref[...], preferred_element_type=jnp.float32)

    pts = []
    for b in range(b_tile):                              # static unroll (small)
        base = b * 4 * hw2
        z0 = z[base:base + hw2]
        z1 = z[base + hw2:base + 2 * hw2]
        z2 = z[base + 2 * hw2:base + 3 * hw2]
        z3 = z[base + 3 * hw2:base + 4 * hw2]
        # MaxPool2d(2): max over the four pool-slot row blocks; bias + ReLU
        # hoisted out of the max (mathematically exact).
        pooled = jnp.maximum(jnp.maximum(z0, z1), jnp.maximum(z2, z3))
        pooled = jnp.maximum(pooled + bk_ref[...], 0.0)          # (HW2, Cp)
        pts.append(pooled.T)                                     # (Cp, HW2), in vregs

    # fc1: contract over the flattened (C, H2, W2) feature vector as C
    # INDEPENDENT MXU matmuls (M = B_tile each) + tree sum (no serial chain).
    parts = []
    for c in range(n_ch):                                # static unroll (=10)
        if b_tile == 1:
            lhs = pts[0][c:c + 1, :]                             # (1, HW2)
        else:
            lhs = jnp.concatenate([pts[b][c:c + 1, :] for b in range(b_tile)],
                                  axis=0)                        # (B_tile, HW2)
        parts.append(jnp.dot(lhs, w1_ref[c],
                             preferred_element_type=jnp.float32))
    h = _tree_sum(parts)                                         # (B_tile, Nh_pad)
    h = jnp.maximum(h + b1_ref[...], 0.0)

    # fc2 (lane-dense padded output store).
    out = jnp.dot(h, w2_ref[...], preferred_element_type=jnp.float32) + b2_ref[...]
    o_ref[0] = out.astype(o_ref.dtype)


# ---------------------------------------------------------------------------
# Forward pass (wrapper = layout glue + one pallas_call)
# ---------------------------------------------------------------------------
def nn_baseline_forward(x, params, *, hidden_channels, n_classes, grid_steps=None):
    B, Cin, H, W = x.shape
    assert H % 2 == 0 and W % 2 == 0, "MaxPool2d(2) requires even H and W"
    H2, W2 = H // 2, W // 2
    HW2 = H2 * W2
    K = 9 * Cin
    Kp = _round_up(K, LANE)                      # im2col K padded to lane-dense

    n_fc_hidden = params["w1"].shape[0]
    assert params["w1"].shape[1] == hidden_channels * HW2

    Cp = _round_up(hidden_channels, LANE)        # conv channels padded to 128
    Nh_pad = _round_up(n_fc_hidden, LANE)        # fc hidden 100 -> 128
    Ncls_pad = _round_up(n_classes, LANE)        # logits 10 -> 128

    if grid_steps is None:
        # Exactly 2 steps when possible so v7x's two TensorCores each take half
        # the batch; on single-TC v5e/v6e the extra step cost is negligible.
        grid_steps = 2 if (B % 2 == 0 and B >= 2) else 1
    assert B % grid_steps == 0
    b_tile = B // grid_steps

    # ---- glue: NCHW -> padded NHWC -> im2col grouped by 2x2 pool-window slot
    xt = jnp.transpose(x, (0, 2, 3, 1))                      # (B, H, W, Cin)
    xp = jnp.pad(xt, ((0, 0), (1, 1), (1, 1), (0, 0)))       # padding=1
    parts = [xp[:, dy:dy + H, dx:dx + W, :] for dy in range(3) for dx in range(3)]
    patches = jnp.concatenate(parts, axis=-1)                # (B, H, W, 9*Cin)
    patches = patches.reshape(B, H2, 2, W2, 2, K)
    patches = jnp.transpose(patches, (0, 2, 4, 1, 3, 5))     # (B, 2, 2, H2, W2, K)
    patches = patches.reshape(B * 4 * HW2, K)                # row = b*4*HW2 + q*HW2 + m
    patches = jnp.pad(patches, ((0, 0), (0, Kp - K)))        # lane-dense K

    # ---- glue: parameter layout massaging (exact PyTorch semantics) ----
    w_conv = params["w_conv"]   # (Cout, Cin, 3, 3)  OIHW
    b_conv = params["b_conv"]   # (Cout,)
    w1 = params["w1"]           # (100, F) applied to (C, H2, W2)-ordered flatten
    b1 = params["b1"]           # (100,)
    w2 = params["w2"]           # (n_classes, 100)
    b2 = params["b2"]           # (n_classes,)

    wk = jnp.transpose(w_conv, (2, 3, 1, 0)).reshape(K, hidden_channels)
    wk = jnp.pad(wk, ((0, Kp - K), (0, Cp - hidden_channels)))           # (Kp, Cp)
    bk = jnp.pad(b_conv, (0, Cp - hidden_channels)).reshape(1, Cp)

    # w1[n, c*HW2 + m]  ->  w1_3d[c, m, n]   (PyTorch flatten order preserved)
    w1_3d = jnp.transpose(w1.reshape(n_fc_hidden, hidden_channels, HW2), (1, 2, 0))
    w1_3d = jnp.pad(w1_3d, ((0, 0), (0, 0), (0, Nh_pad - n_fc_hidden)))
    b1k = jnp.pad(b1, (0, Nh_pad - n_fc_hidden)).reshape(1, Nh_pad)
    w2k = jnp.pad(jnp.transpose(w2),
                  ((0, Nh_pad - n_fc_hidden), (0, Ncls_pad - n_classes)))
    b2k = jnp.pad(b2, (0, Ncls_pad - n_classes)).reshape(1, Ncls_pad)

    kernel = functools.partial(fused_nn_baseline_kernel, b_tile=b_tile, hw2=HW2)

    out_padded = pl.pallas_call(
        kernel,
        out_shape=jax.ShapeDtypeStruct((grid_steps, b_tile, Ncls_pad), jnp.float32),
        grid_spec=pltpu.PrefetchScalarGridSpec(
            num_scalar_prefetch=0,
            grid=(grid_steps,),
            in_specs=[
                pl.BlockSpec((b_tile * 4 * HW2, Kp), lambda s: (s, 0)),
                pl.BlockSpec((Kp, Cp), lambda s: (0, 0)),
                pl.BlockSpec((1, Cp), lambda s: (0, 0)),
                pl.BlockSpec((hidden_channels, HW2, Nh_pad), lambda s: (0, 0, 0)),
                pl.BlockSpec((1, Nh_pad), lambda s: (0, 0)),
                pl.BlockSpec((Nh_pad, Ncls_pad), lambda s: (0, 0)),
                pl.BlockSpec((1, Ncls_pad), lambda s: (0, 0)),
            ],
            out_specs=pl.BlockSpec((1, b_tile, Ncls_pad), lambda s: (s, 0, 0)),
        ),
        compiler_params=pltpu.CompilerParams(dimension_semantics=("parallel",)),
    )(patches, wk, bk, w1_3d, b1k, w2k, b2k)

    return out_padded.reshape(B, Ncls_pad)[:, :n_classes]


# ---------------------------------------------------------------------------
# Deterministic parameter init (shapes from NNBaseline.__init__)
# ---------------------------------------------------------------------------
def init_params(key, input_channel, hidden_channels, n_classes, height, width):
    feature_map_size = (height // 2) * (width // 2) * hidden_channels
    ks = jax.random.split(key, 6)

    def uni(k, shape, fan_in):
        bound = 1.0 / jnp.sqrt(fan_in)
        return jax.random.uniform(k, shape, jnp.float32, -bound, bound)

    return {
        "w_conv": uni(ks[0], (hidden_channels, input_channel, 3, 3), input_channel * 9),
        "b_conv": uni(ks[1], (hidden_channels,), input_channel * 9),
        "w1": uni(ks[2], (100, feature_map_size), feature_map_size),
        "b1": uni(ks[3], (100,), feature_map_size),
        "w2": uni(ks[4], (n_classes, 100), 100),
        "b2": uni(ks[5], (n_classes,), 100),
    }


# Pure-JAX reference of the PyTorch forward (for correctness check only).
def reference_forward(x, params):
    conv = lax.conv_general_dilated(
        x, params["w_conv"], window_strides=(1, 1), padding=((1, 1), (1, 1)),
        dimension_numbers=("NCHW", "OIHW", "NCHW"))
    conv = jnp.maximum(conv + params["b_conv"][None, :, None, None], 0.0)
    pooled = lax.reduce_window(conv, -jnp.inf, lax.max,
                               (1, 1, 2, 2), (1, 1, 2, 2), "VALID")
    feat = pooled.reshape(x.shape[0], -1)            # (C, H2, W2) flatten order
    h = jnp.maximum(feat @ params["w1"].T + params["b1"], 0.0)
    return h @ params["w2"].T + params["b2"]


if __name__ == "__main__":
    B, Cin, H, W = 2, 4, 16, 16
    hidden_channels, n_classes = 10, 10

    key = jax.random.PRNGKey(0)
    kx, kp = jax.random.split(key)
    x = jax.random.normal(kx, (B, Cin, H, W), jnp.float32)
    params = init_params(kp, Cin, hidden_channels, n_classes, H, W)

    fwd = jax.jit(functools.partial(
        nn_baseline_forward, hidden_channels=hidden_channels, n_classes=n_classes))
    out = fwd(x, params)
    out = jax.block_until_ready(out)

    ref = reference_forward(x, params)
    assert out.shape == (B, n_classes), out.shape
    assert jnp.allclose(out, ref, rtol=1e-3, atol=1e-3), (out, ref)
    print("KERNEL_OK")
</pallas_src>

<mosaic_0001>
module attributes {stable_mosaic.version = 11 : i64} {
  func.func @fused_nn_baseline_kernel(%arg0: i32, %arg1: memref<256x128xf32, #tpu.memory_space<vmem>>, %arg2: memref<128x128xf32, #tpu.memory_space<vmem>>, %arg3: memref<1x128xf32, #tpu.memory_space<vmem>>, %arg4: memref<10x64x128xf32, #tpu.memory_space<vmem>>, %arg5: memref<1x128xf32, #tpu.memory_space<vmem>>, %arg6: memref<128x128xf32, #tpu.memory_space<vmem>>, %arg7: memref<1x128xf32, #tpu.memory_space<vmem>>, %arg8: memref<1x1x128xf32, #tpu.memory_space<vmem>>) attributes {dimension_semantics = [#tpu.dimension_semantics<parallel>], iteration_bounds = array<i64: 2>, scalar_prefetch = 0 : i64, scratch_operands = 0 : i64, tpu.core_type = #tpu.core_type<tc>, window_params = [{transform_indices = @transform_0, window_bounds = array<i64: 256, 128>}, {pipeline_mode = #tpu.pipeline_mode<synchronous>, transform_indices = @transform_1, window_bounds = array<i64: 128, 128>}, {pipeline_mode = #tpu.pipeline_mode<synchronous>, transform_indices = @transform_2, window_bounds = array<i64: 1, 128>}, {pipeline_mode = #tpu.pipeline_mode<synchronous>, transform_indices = @transform_3, window_bounds = array<i64: 10, 64, 128>}, {pipeline_mode = #tpu.pipeline_mode<synchronous>, transform_indices = @transform_4, window_bounds = array<i64: 1, 128>}, {pipeline_mode = #tpu.pipeline_mode<synchronous>, transform_indices = @transform_5, window_bounds = array<i64: 128, 128>}, {pipeline_mode = #tpu.pipeline_mode<synchronous>, transform_indices = @transform_6, window_bounds = array<i64: 1, 128>}, {transform_indices = @transform_7, window_bounds = array<i64: 1, 1, 128>}]} {
    %c0 = arith.constant 0 : index
    %c0_0 = arith.constant 0 : index
    %0 = vector.load %arg1[%c0, %c0_0] : memref<256x128xf32, #tpu.memory_space<vmem>>, vector<256x128xf32>
    %c0_1 = arith.constant 0 : index
    %c0_2 = arith.constant 0 : index
    %1 = vector.load %arg2[%c0_1, %c0_2] : memref<128x128xf32, #tpu.memory_space<vmem>>, vector<128x128xf32>
    %cst = arith.constant dense<0.000000e+00> : vector<256x128xf32>
    %2 = tpu.matmul %0, %1, %cst {dimension_numbers = #tpu.dot_dimension_numbers<[1], [0], [0], [1], [0, 0, 1, 1], [], []>} : vector<256x128xf32>, vector<128x128xf32>, vector<256x128xf32> -> vector<256x128xf32>
    %3 = vector.extract_strided_slice %2 {offsets = [0, 0], sizes = [64, 128], strides = [1, 1]} : vector<256x128xf32> to vector<64x128xf32>
    %4 = vector.extract_strided_slice %2 {offsets = [64, 0], sizes = [64, 128], strides = [1, 1]} : vector<256x128xf32> to vector<64x128xf32>
    %5 = vector.extract_strided_slice %2 {offsets = [128, 0], sizes = [64, 128], strides = [1, 1]} : vector<256x128xf32> to vector<64x128xf32>
    %6 = vector.extract_strided_slice %2 {offsets = [192, 0], sizes = [64, 128], strides = [1, 1]} : vector<256x128xf32> to vector<64x128xf32>
    %7 = arith.maximumf %3, %4 : vector<64x128xf32>
    %8 = arith.maximumf %5, %6 : vector<64x128xf32>
    %9 = arith.maximumf %7, %8 : vector<64x128xf32>
    %c0_3 = arith.constant 0 : index
    %c0_4 = arith.constant 0 : index
    %10 = vector.load %arg3[%c0_3, %c0_4] : memref<1x128xf32, #tpu.memory_space<vmem>>, vector<1x128xf32>
    %11 = vector.broadcast %10 : vector<1x128xf32> to vector<64x128xf32>
    %12 = arith.addf %9, %11 : vector<64x128xf32>
    %cst_5 = arith.constant 0.000000e+00 : f32
    %13 = vector.broadcast %cst_5 : f32 to vector<64x128xf32>
    %14 = arith.maximumf %12, %13 : vector<64x128xf32>
    %15 = tpu.transpose %14, [1, 0] : vector<64x128xf32> -> vector<128x64xf32>
    %16 = vector.extract_strided_slice %15 {offsets = [0, 0], sizes = [1, 64], strides = [1, 1]} : vector<128x64xf32> to vector<1x64xf32>
    %c0_6 = arith.constant 0 : index
    %c0_7 = arith.constant 0 : index
    %c0_8 = arith.constant 0 : index
    %17 = vector.load %arg4[%c0_6, %c0_7, %c0_8] : memref<10x64x128xf32, #tpu.memory_space<vmem>>, vector<1x64x128xf32>
    %18 = vector.shape_cast %17 : vector<1x64x128xf32> to vector<64x128xf32>
    %cst_9 = arith.constant dense<0.000000e+00> : vector<1x128xf32>
    %19 = tpu.matmul %16, %18, %cst_9 {dimension_numbers = #tpu.dot_dimension_numbers<[1], [0], [0], [1], [0, 0, 1, 1], [], []>} : vector<1x64xf32>, vector<64x128xf32>, vector<1x128xf32> -> vector<1x128xf32>
    %20 = vector.extract_strided_slice %15 {offsets = [1, 0], sizes = [1, 64], strides = [1, 1]} : vector<128x64xf32> to vector<1x64xf32>
    %c1 = arith.constant 1 : index
    %c0_10 = arith.constant 0 : index
    %c0_11 = arith.constant 0 : index
    %21 = vector.load %arg4[%c1, %c0_10, %c0_11] : memref<10x64x128xf32, #tpu.memory_space<vmem>>, vector<1x64x128xf32>
    %22 = vector.shape_cast %21 : vector<1x64x128xf32> to vector<64x128xf32>
    %cst_12 = arith.constant dense<0.000000e+00> : vector<1x128xf32>
    %23 = tpu.matmul %20, %22, %cst_12 {dimension_numbers = #tpu.dot_dimension_numbers<[1], [0], [0], [1], [0, 0, 1, 1], [], []>} : vector<1x64xf32>, vector<64x128xf32>, vector<1x128xf32> -> vector<1x128xf32>
    %24 = vector.extract_strided_slice %15 {offsets = [2, 0], sizes = [1, 64], strides = [1, 1]} : vector<128x64xf32> to vector<1x64xf32>
    %c2 = arith.constant 2 : index
    %c0_13 = arith.constant 0 : index
    %c0_14 = arith.constant 0 : index
    %25 = vector.load %arg4[%c2, %c0_13, %c0_14] : memref<10x64x128xf32, #tpu.memory_space<vmem>>, vector<1x64x128xf32>
    %26 = vector.shape_cast %25 : vector<1x64x128xf32> to vector<64x128xf32>
    %cst_15 = arith.constant dense<0.000000e+00> : vector<1x128xf32>
    %27 = tpu.matmul %24, %26, %cst_15 {dimension_numbers = #tpu.dot_dimension_numbers<[1], [0], [0], [1], [0, 0, 1, 1], [], []>} : vector<1x64xf32>, vector<64x128xf32>, vector<1x128xf32> -> vector<1x128xf32>
    %28 = vector.extract_strided_slice %15 {offsets = [3, 0], sizes = [1, 64], strides = [1, 1]} : vector<128x64xf32> to vector<1x64xf32>
    %c3 = arith.constant 3 : index
    %c0_16 = arith.constant 0 : index
    %c0_17 = arith.constant 0 : index
    %29 = vector.load %arg4[%c3, %c0_16, %c0_17] : memref<10x64x128xf32, #tpu.memory_space<vmem>>, vector<1x64x128xf32>
    %30 = vector.shape_cast %29 : vector<1x64x128xf32> to vector<64x128xf32>
    %cst_18 = arith.constant dense<0.000000e+00> : vector<1x128xf32>
    %31 = tpu.matmul %28, %30, %cst_18 {dimension_numbers = #tpu.dot_dimension_numbers<[1], [0], [0], [1], [0, 0, 1, 1], [], []>} : vector<1x64xf32>, vector<64x128xf32>, vector<1x128xf32> -> vector<1x128xf32>
    %32 = vector.extract_strided_slice %15 {offsets = [4, 0], sizes = [1, 64], strides = [1, 1]} : vector<128x64xf32> to vector<1x64xf32>
    %c4 = arith.constant 4 : index
    %c0_19 = arith.constant 0 : index
    %c0_20 = arith.constant 0 : index
    %33 = vector.load %arg4[%c4, %c0_19, %c0_20] : memref<10x64x128xf32, #tpu.memory_space<vmem>>, vector<1x64x128xf32>
    %34 = vector.shape_cast %33 : vector<1x64x128xf32> to vector<64x128xf32>
    %cst_21 = arith.constant dense<0.000000e+00> : vector<1x128xf32>
    %35 = tpu.matmul %32, %34, %cst_21 {dimension_numbers = #tpu.dot_dimension_numbers<[1], [0], [0], [1], [0, 0, 1, 1], [], []>} : vector<1x64xf32>, vector<64x128xf32>, vector<1x128xf32> -> vector<1x128xf32>
    %36 = vector.extract_strided_slice %15 {offsets = [5, 0], sizes = [1, 64], strides = [1, 1]} : vector<128x64xf32> to vector<1x64xf32>
    %c5 = arith.constant 5 : index
    %c0_22 = arith.constant 0 : index
    %c0_23 = arith.constant 0 : index
    %37 = vector.load %arg4[%c5, %c0_22, %c0_23] : memref<10x64x128xf32, #tpu.memory_space<vmem>>, vector<1x64x128xf32>
    %38 = vector.shape_cast %37 : vector<1x64x128xf32> to vector<64x128xf32>
    %cst_24 = arith.constant dense<0.000000e+00> : vector<1x128xf32>
    %39 = tpu.matmul %36, %38, %cst_24 {dimension_numbers = #tpu.dot_dimension_numbers<[1], [0], [0], [1], [0, 0, 1, 1], [], []>} : vector<1x64xf32>, vector<64x128xf32>, vector<1x128xf32> -> vector<1x128xf32>
    %40 = vector.extract_strided_slice %15 {offsets = [6, 0], sizes = [1, 64], strides = [1, 1]} : vector<128x64xf32> to vector<1x64xf32>
    %c6 = arith.constant 6 : index
    %c0_25 = arith.constant 0 : index
    %c0_26 = arith.constant 0 : index
    %41 = vector.load %arg4[%c6, %c0_25, %c0_26] : memref<10x64x128xf32, #tpu.memory_space<vmem>>, vector<1x64x128xf32>
    %42 = vector.shape_cast %41 : vector<1x64x128xf32> to vector<64x128xf32>
    %cst_27 = arith.constant dense<0.000000e+00> : vector<1x128xf32>
    %43 = tpu.matmul %40, %42, %cst_27 {dimension_numbers = #tpu.dot_dimension_numbers<[1], [0], [0], [1], [0, 0, 1, 1], [], []>} : vector<1x64xf32>, vector<64x128xf32>, vector<1x128xf32> -> vector<1x128xf32>
    %44 = vector.extract_strided_slice %15 {offsets = [7, 0], sizes = [1, 64], strides = [1, 1]} : vector<128x64xf32> to vector<1x64xf32>
    %c7 = arith.constant 7 : index
    %c0_28 = arith.constant 0 : index
    %c0_29 = arith.constant 0 : index
    %45 = vector.load %arg4[%c7, %c0_28, %c0_29] : memref<10x64x128xf32, #tpu.memory_space<vmem>>, vector<1x64x128xf32>
    %46 = vector.shape_cast %45 : vector<1x64x128xf32> to vector<64x128xf32>
    %cst_30 = arith.constant dense<0.000000e+00> : vector<1x128xf32>
    %47 = tpu.matmul %44, %46, %cst_30 {dimension_numbers = #tpu.dot_dimension_numbers<[1], [0], [0], [1], [0, 0, 1, 1], [], []>} : vector<1x64xf32>, vector<64x128xf32>, vector<1x128xf32> -> vector<1x128xf32>
    %48 = vector.extract_strided_slice %15 {offsets = [8, 0], sizes = [1, 64], strides = [1, 1]} : vector<128x64xf32> to vector<1x64xf32>
    %c8 = arith.constant 8 : index
    %c0_31 = arith.constant 0 : index
    %c0_32 = arith.constant 0 : index
    %49 = vector.load %arg4[%c8, %c0_31, %c0_32] : memref<10x64x128xf32, #tpu.memory_space<vmem>>, vector<1x64x128xf32>
    %50 = vector.shape_cast %49 : vector<1x64x128xf32> to vector<64x128xf32>
    %cst_33 = arith.constant dense<0.000000e+00> : vector<1x128xf32>
    %51 = tpu.matmul %48, %50, %cst_33 {dimension_numbers = #tpu.dot_dimension_numbers<[1], [0], [0], [1], [0, 0, 1, 1], [], []>} : vector<1x64xf32>, vector<64x128xf32>, vector<1x128xf32> -> vector<1x128xf32>
    %52 = vector.extract_strided_slice %15 {offsets = [9, 0], sizes = [1, 64], strides = [1, 1]} : vector<128x64xf32> to vector<1x64xf32>
    %c9 = arith.constant 9 : index
    %c0_34 = arith.constant 0 : index
    %c0_35 = arith.constant 0 : index
    %53 = vector.load %arg4[%c9, %c0_34, %c0_35] : memref<10x64x128xf32, #tpu.memory_space<vmem>>, vector<1x64x128xf32>
    %54 = vector.shape_cast %53 : vector<1x64x128xf32> to vector<64x128xf32>
    %cst_36 = arith.constant dense<0.000000e+00> : vector<1x128xf32>
    %55 = tpu.matmul %52, %54, %cst_36 {dimension_numbers = #tpu.dot_dimension_numbers<[1], [0], [0], [1], [0, 0, 1, 1], [], []>} : vector<1x64xf32>, vector<64x128xf32>, vector<1x128xf32> -> vector<1x128xf32>
    %56 = arith.addf %19, %23 : vector<1x128xf32>
    %57 = arith.addf %27, %31 : vector<1x128xf32>
    %58 = arith.addf %35, %39 : vector<1x128xf32>
    %59 = arith.addf %43, %47 : vector<1x128xf32>
    %60 = arith.addf %51, %55 : vector<1x128xf32>
    %61 = arith.addf %56, %57 : vector<1x128xf32>
    %62 = arith.addf %58, %59 : vector<1x128xf32>
    %63 = arith.addf %61, %62 : vector<1x128xf32>
    %64 = arith.addf %63, %60 : vector<1x128xf32>
    %c0_37 = arith.constant 0 : index
    %c0_38 = arith.constant 0 : index
    %65 = vector.load %arg5[%c0_37, %c0_38] : memref<1x128xf32, #tpu.memory_space<vmem>>, vector<1x128xf32>
    %66 = arith.addf %64, %65 : vector<1x128xf32>
    %cst_39 = arith.constant 0.000000e+00 : f32
    %67 = vector.broadcast %cst_39 : f32 to vector<1x128xf32>
    %68 = arith.maximumf %66, %67 : vector<1x128xf32>
    %c0_40 = arith.constant 0 : index
    %c0_41 = arith.constant 0 : index
    %69 = vector.load %arg6[%c0_40, %c0_41] : memref<128x128xf32, #tpu.memory_space<vmem>>, vector<128x128xf32>
    %cst_42 = arith.constant dense<0.000000e+00> : vector<1x128xf32>
    %70 = tpu.matmul %68, %69, %cst_42 {dimension_numbers = #tpu.dot_dimension_numbers<[1], [0], [0], [1], [0, 0, 1, 1], [], []>} : vector<1x128xf32>, vector<128x128xf32>, vector<1x128xf32> -> vector<1x128xf32>
    %c0_43 = arith.constant 0 : index
    %c0_44 = arith.constant 0 : index
    %71 = vector.load %arg7[%c0_43, %c0_44] : memref<1x128xf32, #tpu.memory_space<vmem>>, vector<1x128xf32>
    %72 = arith.addf %70, %71 : vector<1x128xf32>
    %c0_45 = arith.constant 0 : index
    %c0_46 = arith.constant 0 : index
    %c0_47 = arith.constant 0 : index
    %73 = vector.load %arg8[%c0_45, %c0_46, %c0_47] : memref<1x1x128xf32, #tpu.memory_space<vmem>>, vector<1x1x128xf32>
    %74 = vector.shape_cast %73 : vector<1x1x128xf32> to vector<1x128xf32>
    %75 = vector.shape_cast %72 : vector<1x128xf32> to vector<1x1x128xf32>
    tpu.vector_store %arg8[%c0_45, %c0_46, %c0_47], %75 {strides = array<i32>} : memref<1x1x128xf32, #tpu.memory_space<vmem>>, vector<1x1x128xf32>,
    return
  }
  func.func @transform_0(%arg0: i32) -> (i32, i32) {
    %c0_i32 = arith.constant 0 : i32
    %c0_i32_0 = arith.constant 0 : i32
    return %arg0, %c0_i32 : i32, i32
  }
  func.func @transform_1(%arg0: i32) -> (i32, i32) {
    %c0_i32 = arith.constant 0 : i32
    %c0_i32_0 = arith.constant 0 : i32
    %c0_i32_1 = arith.constant 0 : i32
    return %c0_i32, %c0_i32_0 : i32, i32
  }
  func.func @transform_2(%arg0: i32) -> (i32, i32) {
    %c0_i32 = arith.constant 0 : i32
    %c0_i32_0 = arith.constant 0 : i32
    %c0_i32_1 = arith.constant 0 : i32
    return %c0_i32, %c0_i32_0 : i32, i32
  }
  func.func @transform_3(%arg0: i32) -> (i32, i32, i32) {
    %c0_i32 = arith.constant 0 : i32
    %c0_i32_0 = arith.constant 0 : i32
    %c0_i32_1 = arith.constant 0 : i32
    %c0_i32_2 = arith.constant 0 : i32
    return %c0_i32, %c0_i32_0, %c0_i32_1 : i32, i32, i32
  }
  func.func @transform_4(%arg0: i32) -> (i32, i32) {
    %c0_i32 = arith.constant 0 : i32
    %c0_i32_0 = arith.constant 0 : i32
    %c0_i32_1 = arith.constant 0 : i32
    return %c0_i32, %c0_i32_0 : i32, i32
  }
  func.func @transform_5(%arg0: i32) -> (i32, i32) {
    %c0_i32 = arith.constant 0 : i32
    %c0_i32_0 = arith.constant 0 : i32
    %c0_i32_1 = arith.constant 0 : i32
    return %c0_i32, %c0_i32_0 : i32, i32
  }
  func.func @transform_6(%arg0: i32) -> (i32, i32) {
    %c0_i32 = arith.constant 0 : i32
    %c0_i32_0 = arith.constant 0 : i32
    %c0_i32_1 = arith.constant 0 : i32
    return %c0_i32, %c0_i32_0 : i32, i32
  }
  func.func @transform_7(%arg0: i32) -> (i32, i32, i32) {
    %c0_i32 = arith.constant 0 : i32
    %c0_i32_0 = arith.constant 0 : i32
    %c0_i32_1 = arith.constant 0 : i32
    return %arg0, %c0_i32, %c0_i32_0 : i32, i32, i32
  }
}

</mosaic_0001>

<bundles_post_ra>
// kernel: nn_baseline_forward.1
= control target key start
LH: loop header
LB: loop body
LE: loop exit
PB: predicated region body
PF: predicated region fallthrough
CT: control target
= control target key end

     0   :  { %12 = vsyncpa [#allocation3], 0  ;;  %s3059_s0 = inlined_call_operand.vmem [shape: f32[512,128], index: 0, kind: input, shape index: {}]   ;;  %s3060_s1 = inlined_call_operand.vmem [shape: f32[128,128], index: 1, kind: input, shape index: {}]   ;;  %s3061_s2 = inlined_call_operand.vmem [shape: f32[1,128], index: 2, kind: input, shape index: {}]   ;;  %s3062_s3 = inlined_call_operand.vmem [shape: f32[10,64,128], index: 3, kind: input, shape index: {}]   ;;  %s3063_s4 = inlined_call_operand.vmem [shape: f32[1,128], index: 4, kind: input, shape index: {}]   ;;  %s3064_s5 = inlined_call_operand.vmem [shape: f32[128,128], index: 5, kind: input, shape index: {}]   ;;  %s3065_s6 = inlined_call_operand.vmem [shape: f32[1,128], index: 6, kind: input, shape index: {}]   ;;  %s3066_s7 = inlined_call_operand.hbm [shape: f32[2,1,128], index: 7, kind: output, shape index: {}]  }
   0x1   :  { %14 = vsyncpa [#allocation3 + $0x1], 0  ;;  %s2491_s24 = smov 0   ;;  %s2493_s25 = smov 0  }
   0x2   :  { %s2495_s26 = smov 0   ;;  %s2497_s27 = smov 0  }
   0x3 LB: > { %s2512_s28 = sadd.s32 4294967295, %s2445_s27   ;;  %s1613_s29 = sadd.s32 4294967294, %s2445_s27   ;;  %s2445_s27 = sphi %s2497_s27, %s3072_s27   ;;  %s2441_s26 = sphi %s2495_s26, %s3071_s26   ;;  %s2437_s25 = sphi %s2493_s25, %s3070_s25   ;;  %s2433_s24 = sphi %s2491_s24, %s3069_s24  }
   0x4   : > { %s2516_s30 = sadd.s32 1, %s2445_s27   ;;  %s179_s8 = sadd.s32 1, %s2441_s26 }
   0x5   : > { %s176_s9 = ssub.s32 %s2445_s27, %s2516_s30  ;;  %p189_p0 = scmp.ne.s32.totalorder %s2441_s26, %s2437_s25 }
   0x6   : > { %p177_p1 = scmp.eq.s32.totalorder %s176_s9, 0  ;;  %p190_p2 = scmp.eq.s32.totalorder %s2512_s28, 1 }
   0x7   : > { %p195_p3 = scmp.ne.s32.totalorder %s2437_s25, %s2433_s24  ;;  %p196_p4 = scmp.eq.s32.totalorder %s1613_s29, 1 }
   0x8   : > { %s2527_s10 = scalar_select %p177_p1, %s2441_s26, %s179_s8  }
   0x9   : > { %p2529_p5 = por %p190_p2, %p189_p0  ;;  %p2533_p6 = por %p196_p4, %p195_p3 }
   0xa   : > { %p1616_p7 = scmp.ge.s32.totalorder %s2445_s27, 1  ;;  %p241_p8 = scmp.lt.s32.totalorder %s2445_s27, 3 }
   0xc   : > { %p242_p9 = pnand %p1616_p7, %p241_p8 }
   0xd   : > { %v310_v0 = vld [vmem:[%s3060_s1] sm:$0xff] (!%p242_p9)  ;;  %v311_v1 = vld [vmem:[%s3060_s1 + $0x8] sm:$0xff] (!%p242_p9)  ;;  %v312_v2 = vld [vmem:[%s3060_s1 + $0x10] sm:$0xff] (!%p242_p9)  ;;  %s1617_s19 = sshll.u32 (!%p242_p9), %s2512_s28, 5  ;;  %v2447_v59 = vmov (!%p242_p9), 0.0|0.0   ;;  %vm2448_vm0 = vmmov (!%p242_p9), 0  }
   0xe   : > { %245 = sbr.rel (%p242_p9) target bundleno = 996 (0x3e4), region = 48  ;;  %v2165_v3 = vpack.c.bf16 (!%p242_p9), %v311_v1, %v310_v0  ;;  %v313_v4 = vld [vmem:[%s3060_s1 + $0x18] sm:$0xff] (!%p242_p9)  ;;  %p273_p10 = scmp.lt.s32.totalorder (!%p242_p9), %s1617_s19, 63  ;;  %v314_v6 = vld [vmem:[%s3060_s1 + $0x20] sm:$0xff] (!%p242_p9)  ;;  %v315_v7 = vld [vmem:[%s3060_s1 + $0x28] sm:$0xff] (!%p242_p9)  ;;  %2197 = vmatprep.subr.bf16.mxu1 (!%p242_p9), %v2447_v59  ;;  %vm649_vm1 = vcmask (!%p242_p9), 523264  }
   0xf   : > { %v2169_v5 = vpack.c.bf16 (!%p242_p9), %v313_v4, %v312_v2  ;;  %v2173_v8 = vpack.c.bf16 (!%p242_p9), %v315_v7, %v314_v6  ;;  %v316_v9 = vld [vmem:[%s3060_s1 + $0x30] sm:$0xff] (!%p242_p9)  ;;  %v317_v10 = vld [vmem:[%s3060_s1 + $0x38] sm:$0xff] (!%p242_p9)  ;;  %v318_v13 = vld [vmem:[%s3060_s1 + $0x40] sm:$0xff] (!%p242_p9)  ;;  %s270_s23 = sand.u32 (!%p242_p9), 1, %s2437_s25  }
  0x10   : > { %2166 = vmatprep.subr.bf16.mxu0 (!%p242_p9), %v2165_v3  ;;  %v2177_v12 = vpack.c.bf16 (!%p242_p9), %v317_v10, %v316_v9  ;;  %v319_v14 = vld [vmem:[%s3060_s1 + $0x48] sm:$0xff] (!%p242_p9)  ;;  %v320_v16 = vld [vmem:[%s3060_s1 + $0x50] sm:$0xff] (!%p242_p9)  ;;  %v321_v17 = vld [vmem:[%s3060_s1 + $0x58] sm:$0xff] (!%p242_p9)  ;;  %s271_s13 = scalar_lea.vmem (!%p242_p9), [#allocation2], %s270_s23  ;;  %s1546_s17 = scalar_lea.sflag (!%p242_p9), [#allocation3], %s270_s23 }
  0x11   : > { %2168 = vmatpush3.bf16.msra.mxu0 (!%p242_p9), %v2165_v3  ;;  %v2181_v15 = vpack.c.bf16 (!%p242_p9), %v319_v14, %v318_v13  ;;  %v2185_v18 = vpack.c.bf16 (!%p242_p9), %v321_v17, %v320_v16  ;;  %v322_v19 = vld [vmem:[%s3060_s1 + $0x60] sm:$0xff] (!%p242_p9)  ;;  %v323_v20 = vld [vmem:[%s3060_s1 + $0x68] sm:$0xff] (!%p242_p9)  ;;  %v324_v22 = vld [vmem:[%s3060_s1 + $0x70] sm:$0xff] (!%p242_p9)  ;;  %v2449_v3 = vmov (!%p242_p9), 0.0   ;;  %s1558_s14 = sshll.u32 (!%p242_p9), %s271_s13, 4  ;;  %s3019_s14 = int_to_ptr.vmem [resolvable:$true] %s1558_s14 }
  0x12   : > { %2170 = vmatprep.subr.bf16.mxu0 (!%p242_p9), %v2169_v5  ;;  %v2189_v21 = vpack.c.bf16 (!%p242_p9), %v323_v20, %v322_v19  ;;  %v325_v23 = vld [vmem:[%s3060_s1 + $0x78] sm:$0xff] (!%p242_p9)  ;;  %v630_v56 = vld [vmem:[%s3062_s3] sm:$0xff] (!%p242_p9)  ;;  %v631_v57 = vld [vmem:[%s3062_s3 + $0x8] sm:$0xff] (!%p242_p9)  ;;  %1956 = vmatprep.mubr.msk.f32.mxu1 (!%p242_p9), %vm2448_vm0, %v2449_v3  ;;  %s2383_s18 = scalar_lea.vmem (!%p242_p9), %s3019_s14, 16 }
  0x13   : > { %v2193_v24 = vpack.c.bf16 (!%p242_p9), %v325_v23, %v324_v22  ;;  %v1620_v58 = vld [vmem:[%s3062_s3 + $0x40] sm:$0xff] (!%p242_p9)  ;;  %v2258_v60 = vpack.c.bf16 (!%p242_p9), %v631_v57, %v630_v56  ;;  %v1621_v61 = vld [vmem:[%s3062_s3 + $0x48] sm:$0xff] (!%p242_p9)  ;;  %v632_v62 = vld [vmem:[%s3062_s3 + $0x10] sm:$0xff] (!%p242_p9)  ;;  %p2384_p11 = scmp.ne.s32.totalorder (!%p242_p9), %s3019_s14, %s2383_s18 }
  0x14   : > { %v633_v63 = vld [vmem:[%s3062_s3 + $0x18] sm:$0xff] (!%p242_p9)  ;;  %v2198_v0 = vpack.c.bf16 (!%p242_p9), %v1621_v61, %v1620_v58  ;;  %v1622_v1 = vld [vmem:[%s3062_s3 + $0x50] sm:$0xff] (!%p242_p9)  ;;  %v634_v6 = vld [vmem:[%s3062_s3 + $0x20] sm:$0xff] (!%p242_p9) }
  0x15   : > { %s3074_s19 = smov (!%p273_p10, %s1617_s19), 63  ;;  %2172 = vmatpush3.bf16.msra.mxu0 %v2169_v5  ;;  %v1623_v2 = vld [vmem:[%s3062_s3 + $0x58] sm:$0xff]  ;;  %v2261_v4 = vpack.c.bf16 %v633_v63, %v632_v62  ;;  %v635_v7 = vld [vmem:[%s3062_s3 + $0x28] sm:$0xff]  ;;  %v1626_v14 = vld [vmem:[%s3062_s3 + $0x70] sm:$0xff]  ;;  %p2385_p12 = pnand %p2384_p11, %p2529_p5 }
  0x16   : > { %s1618_s9 = sshll.u32 %s3074_s19, 3  ;;  %2174 = vmatprep.subr.bf16.mxu0 %v2173_v8  ;;  %2199 = vmatpush3.bf16.msra.mxu1 %v2198_v0  ;;  %v2201_v5 = vpack.c.bf16 %v1623_v2, %v1622_v1  ;;  %v1625_v9 = vld [vmem:[%s3062_s3 + $0x68] sm:$0xff]  ;;  %v2264_v10 = vpack.c.bf16 %v635_v7, %v634_v6  ;;  %v637_v13 = vld [vmem:[%s3062_s3 + $0x38] sm:$0xff] }
  0x17   : > { %s2567_s20 = scalar_lea.vmem %s3059_s0, %s1618_s9  ;;  %2200 = vmatprep.subr.bf16.mxu1 %v2447_v59  ;;  %s1702_s9 = sshll.u32 %s2512_s28, 4 }
  0x18   : > { %v278_v11 = vld [vmem:[%s2567_s20] sm:$0xff]  ;;  %v279_v25 = vld [vmem:[%s2567_s20 + $0x8] sm:$0xff]  ;;  %v280_v26 = vld [vmem:[%s2567_s20 + $0x10] sm:$0xff]  ;;  %s3017_s16 = scalar_lea.hbm %s3066_s7, %s1702_s9  ;;  %p2386_p13 = pneg %p2385_p12 }
  0x19   : > { %1892 = vmatprep.mubr.f32.mxu0 %v278_v11  ;;  %2176 = vmatpush3.bf16.msra.mxu0 %v2173_v8  ;;  %v281_v27 = vld [vmem:[%s2567_s20 + $0x18] sm:$0xff]  ;;  %v282_v28 = vld [vmem:[%s2567_s20 + $0x20] sm:$0xff]  ;;  %v283_v29 = vld [vmem:[%s2567_s20 + $0x28] sm:$0xff]  ;;  %s2450_s28 = smov [#allocation2]  }
  0x1a   : > { %2178 = vmatprep.subr.bf16.mxu0 %v2177_v12  ;;  %v284_v30 = vld [vmem:[%s2567_s20 + $0x30] sm:$0xff]  ;;  %v285_v31 = vld [vmem:[%s2567_s20 + $0x38] sm:$0xff]  ;;  %v286_v32 = vld [vmem:[%s2567_s20 + $0x40] sm:$0xff]  ;;  %2202 = vmatpush3.bf16.msra.mxu1 %v2201_v5  ;;  %s2387_s19 = sshll.u32 %s2450_s28, 4  ;;  %s2388_s19 = int_to_ptr.vmem [resolvable:$false] %s2387_s19 }
  0x1b   : > { %v287_v33 = vld [vmem:[%s2567_s20 + $0x48] sm:$0xff]  ;;  %v288_v34 = vld [vmem:[%s2567_s20 + $0x50] sm:$0xff]  ;;  %v289_v35 = vld [vmem:[%s2567_s20 + $0x58] sm:$0xff]  ;;  %2203 = vmatprep.subr.bf16.mxu1 %v2447_v59  ;;  %s2389_s21 = scalar_lea.vmem %s2388_s19, 32  ;;  %p2390_p0 = scmp.lt.s32.totalorder %s3019_s14, %s2388_s19 }
  0x1c   : > { %v290_v36 = vld [vmem:[%s2567_s20 + $0x60] sm:$0xff]  ;;  %v291_v37 = vld [vmem:[%s2567_s20 + $0x68] sm:$0xff]  ;;  %v292_v38 = vld [vmem:[%s2567_s20 + $0x70] sm:$0xff]  ;;  %p2391_p1 = scmp.lt.s32.totalorder %s2389_s21, %s2383_s18 }
  0x1d   : > { %2180 = vmatpush3.bf16.msra.mxu0 %v2177_v12  ;;  %v293_v39 = vld [vmem:[%s2567_s20 + $0x78] sm:$0xff]  ;;  %v294_v40 = vld [vmem:[%s2567_s20 + $0x80] sm:$0xff]  ;;  %v295_v41 = vld [vmem:[%s2567_s20 + $0x88] sm:$0xff] }
  0x1e   : > { %2182 = vmatprep.subr.bf16.mxu0 %v2181_v15  ;;  %v296_v42 = vld [vmem:[%s2567_s20 + $0x90] sm:$0xff]  ;;  %v297_v43 = vld [vmem:[%s2567_s20 + $0x98] sm:$0xff]  ;;  %v298_v44 = vld [vmem:[%s2567_s20 + $0xa0] sm:$0xff]  ;;  %p2392_p2 = por %p2391_p1, %p2390_p0 }
  0x1f   : > { %v299_v45 = vld [vmem:[%s2567_s20 + $0xa8] sm:$0xff]  ;;  %v300_v46 = vld [vmem:[%s2567_s20 + $0xb0] sm:$0xff]  ;;  %v301_v47 = vld [vmem:[%s2567_s20 + $0xb8] sm:$0xff] }
  0x20   : > { %v302_v48 = vld [vmem:[%s2567_s20 + $0xc0] sm:$0xff]  ;;  %v303_v49 = vld [vmem:[%s2567_s20 + $0xc8] sm:$0xff]  ;;  %v304_v50 = vld [vmem:[%s2567_s20 + $0xd0] sm:$0xff]  ;;  %p2393_p3 = pnand %p2392_p2, %p2386_p13 }
  0x21   : > { %2184 = vmatpush3.bf16.msra.mxu0 %v2181_v15  ;;  %v305_v51 = vld [vmem:[%s2567_s20 + $0xd8] sm:$0xff]  ;;  %v306_v52 = vld [vmem:[%s2567_s20 + $0xe0] sm:$0xff]  ;;  %v307_v53 = vld [vmem:[%s2567_s20 + $0xe8] sm:$0xff] }
  0x22   : > { %2186 = vmatprep.subr.bf16.mxu0 %v2185_v18  ;;  %v308_v54 = vld [vmem:[%s2567_s20 + $0xf0] sm:$0xff]  ;;  %v309_v55 = vld [vmem:[%s2567_s20 + $0xf8] sm:$0xff]  ;;  %v1624_v8 = vld [vmem:[%s3062_s3 + $0x60] sm:$0xff] }
  0x23   : > { %v2204_v11 = vpack.c.bf16 %v1625_v9, %v1624_v8  ;;  %v636_v12 = vld [vmem:[%s3062_s3 + $0x30] sm:$0xff]  ;;  %v1627_v15 = vld [vmem:[%s3062_s3 + $0x78] sm:$0xff] }
  0x24   : > { %v2267_v16 = vpack.c.bf16 %v637_v13, %v636_v12  ;;  %v2207_v17 = vpack.c.bf16 %v1627_v15, %v1626_v14 }
  0x25   : > { %2188 = vmatpush3.bf16.msra.mxu0 %v2185_v18  ;;  %2205 = vmatpush3.bf16.msra.mxu1 %v2204_v11 }
  0x26   : > { %2190 = vmatprep.subr.bf16.mxu0 %v2189_v21  ;;  %2206 = vmatprep.subr.bf16.mxu1 %v2447_v59 }
  0x29   : > { %2192 = vmatpush3.bf16.msra.mxu0 %v2189_v21  ;;  %2208 = vmatpush3.bf16.msra.mxu1 %v2207_v17 }
  0x2a   : > { %2194 = vmatprep.subr.bf16.mxu0 %v2193_v24  ;;  %2209 = vmatprep.subr.bf16.mxu1 %v2447_v59 }
  0x2d   : > { %2196 = vmatpush3.bf16.msra.mxu0 %v2193_v24 }
  0x2e   : > { %2257 = vmatprep.subr.bf16.mxu0 %v2447_v59 }
  0x30   : > { %1893 = vmatmul.mubr.f32.vlgmr.msra.gmra.mrb[0].mxu0 %v279_v25 }
  0x31   : > { %1895 = vmatprep.mubr.f32.mxu0 %v280_v26  ;;  %2259 = vmatpush3.bf16.msra.mxu0 %v2258_v60 }
  0x32   : > { %2260 = vmatprep.subr.bf16.mxu0 %v2447_v59 }
  0x34   : > { %1896 = vmatmul.mubr.f32.gmra.mrb[2].mxu0 %v281_v27 }
  0x35   : > { %1898 = vmatprep.mubr.f32.mxu0 %v282_v28  ;;  %2262 = vmatpush3.bf16.msra.mxu0 %v2261_v4 }
  0x36   : > { %2263 = vmatprep.subr.bf16.mxu0 %v2447_v59 }
  0x38   : > { %1899 = vmatmul.mubr.f32.gmra.mrb[4].mxu0 %v283_v29 }
  0x39   : > { %1901 = vmatprep.mubr.f32.mxu0 %v284_v30  ;;  %2265 = vmatpush3.bf16.msra.mxu0 %v2264_v10 }
  0x3a   : > { %2266 = vmatprep.subr.bf16.mxu0 %v2447_v59 }
  0x3c   : > { %1902 = vmatmul.mubr.f32.gmra.mrb[6].mxu0 %v285_v31 }
  0x3d   : > { %1904 = vmatprep.mubr.f32.mxu0 %v286_v32  ;;  %2268 = vmatpush3.bf16.msra.mxu0 %v2267_v16 }
  0x3e   : > { %2281 = vmatprep.subr.bf16.mxu0 %v2447_v59 }
  0x40   : > { %1905 = vmatmul.mubr.f32.gmra.mrb[8].mxu0 %v287_v33 }
  0x41   : > { %1907 = vmatprep.mubr.f32.mxu0 %v288_v34 }
  0x44   : > { %1908 = vmatmul.mubr.f32.gmra.mrb[10].mxu0 %v289_v35 }
  0x45   : > { %1910 = vmatprep.mubr.f32.mxu0 %v290_v36 }
  0x48   : > { %1911 = vmatmul.mubr.f32.gmra.mrb[12].mxu0 %v291_v37 }
  0x49   : > { %1913 = vmatprep.mubr.f32.mxu0 %v292_v38 }
  0x4c   : > { %1914 = vmatmul.mubr.f32.gmra.mrb[14].mxu0 %v293_v39 }
  0x4d   : > { %1916 = vmatprep.mubr.f32.mxu0 %v294_v40 }
  0x50   : > { %1917 = vmatmul.mubr.f32.gmra.mrb[16].mxu0 %v295_v41 }
  0x51   : > { %1919 = vmatprep.mubr.f32.mxu0 %v296_v42 }
  0x54   : > { %1920 = vmatmul.mubr.f32.gmra.mrb[18].mxu0 %v297_v43 }
  0x55   : > { %1922 = vmatprep.mubr.f32.mxu0 %v298_v44 }
  0x58   : > { %1923 = vmatmul.mubr.f32.gmra.mrb[20].mxu0 %v299_v45 }
  0x59   : > { %1925 = vmatprep.mubr.f32.mxu0 %v300_v46 }
  0x5c   : > { %1926 = vmatmul.mubr.f32.gmra.mrb[22].mxu0 %v301_v47 }
  0x5d   : > { %1928 = vmatprep.mubr.f32.mxu0 %v302_v48 }
  0x60   : > { %1929 = vmatmul.mubr.f32.gmra.mrb[24].mxu0 %v303_v49 }
  0x61   : > { %1931 = vmatprep.mubr.f32.mxu0 %v304_v50 }
  0x64   : > { %1932 = vmatmul.mubr.f32.gmra.mrb[26].mxu0 %v305_v51 }
  0x65   : > { %1934 = vmatprep.mubr.f32.mxu0 %v306_v52 }
  0x68   : > { %1935 = vmatmul.mubr.f32.gmra.mrb[28].mxu0 %v307_v53 }
  0x69   : > { %1937 = vmatprep.mubr.f32.mxu0 %v308_v54 }
  0x6c   : > { %1938 = vmatmul.mubr.f32.gmra.mrb[30].mxu0 %v309_v55  ;;  %v1619_v55 = vld [vmem:[%s3061_s2] ss:$0 sm:$0xff] }
  0x6d   : > { %2051 = vmatprep.mubr.msk.f32.mxu0 %vm2448_vm0, %v2449_v3 }
 0x103   : > { %v1894_v18 = vpop.f32.mrb[0].mxu0 }
 0x104   : > { %v392_v19 = vpop.f32.mrb[1].mxu0 }
 0x107   : > { %v1897_v20 = vpop.f32.mrb[2].mxu0 }
 0x108   : > { %v402_v21 = vpop.f32.mrb[3].mxu0 }
 0x10b   : > { %v1900_v22 = vpop.f32.mrb[4].mxu0 }
 0x10c   : > { %v412_v23 = vpop.f32.mrb[5].mxu0 }
 0x10f   : > { %v1903_v24 = vpop.f32.mrb[6].mxu0 }
 0x110   : > { %v422_v25 = vpop.f32.mrb[7].mxu0 }
 0x113   : > { %v1906_v26 = vpop.f32.mrb[8].mxu0 }
 0x114   : > { %v552_v27 = vmax.f32 %v1894_v18, %v1906_v26  ;;  %v432_v28 = vpop.f32.mrb[9].mxu0 }
 0x115   : > { %v551_v29 = vmax.f32 %v392_v19, %v432_v28 }
 0x117   : > { %v1909_v30 = vpop.f32.mrb[10].mxu0 }
 0x118   : > { %v554_v31 = vmax.f32 %v1897_v20, %v1909_v30  ;;  %v442_v32 = vpop.f32.mrb[11].mxu0  ;;  %v1647_v30 = vld [vmem:[%s3062_s3 + $0x108] sm:$0xff] }
 0x119   : > { %v553_v33 = vmax.f32 %v402_v21, %v442_v32  ;;  %v1638_v32 = vld [vmem:[%s3062_s3 + $0xc8] sm:$0xff] }
 0x11b   : > { %v1912_v34 = vpop.f32.mrb[12].mxu0 }
 0x11c   : > { %v556_v35 = vmax.f32 %v1900_v22, %v1912_v34  ;;  %v452_v36 = vpop.f32.mrb[13].mxu0  ;;  %v1648_v34 = vld [vmem:[%s3062_s3 + $0x110] sm:$0xff] }
 0x11d   : > { %v555_v37 = vmax.f32 %v412_v23, %v452_v36 }
 0x11f   : > { %v1915_v38 = vpop.f32.mrb[14].mxu0 }
 0x120   : > { %v558_v39 = vmax.f32 %v1903_v24, %v1915_v38  ;;  %v462_v40 = vpop.f32.mrb[15].mxu0 }
 0x121   : > { %v557_v41 = vmax.f32 %v422_v25, %v462_v40  ;;  %v1640_v40 = vld [vmem:[%s3062_s3 + $0xd8] sm:$0xff] }
 0x123   : > { %v1918_v42 = vpop.f32.mrb[16].mxu0 }
 0x124   : > { %v472_v43 = vpop.f32.mrb[17].mxu0 }
 0x127   : > { %v1921_v44 = vpop.f32.mrb[18].mxu0 }
 0x128   : > { %v482_v45 = vpop.f32.mrb[19].mxu0 }
 0x12b   : > { %v1924_v46 = vpop.f32.mrb[20].mxu0 }
 0x12c   : > { %v492_v47 = vpop.f32.mrb[21].mxu0 }
 0x12f   : > { %v1927_v48 = vpop.f32.mrb[22].mxu0 }
 0x130   : > { %v502_v49 = vpop.f32.mrb[23].mxu0 }
 0x133   : > { %v1930_v50 = vpop.f32.mrb[24].mxu0 }
 0x134   : > { %v560_v51 = vmax.f32 %v1918_v42, %v1930_v50  ;;  %v512_v52 = vpop.f32.mrb[25].mxu0  ;;  %v1650_v42 = vld [vmem:[%s3062_s3 + $0x120] sm:$0xff] }
 0x135   : > { %v559_v53 = vmax.f32 %v472_v43, %v512_v52  ;;  %v1651_v43 = vld [vmem:[%s3062_s3 + $0x128] sm:$0xff]  ;;  %v1644_v52 = vld [vmem:[%s3062_s3 + $0xf8] sm:$0xff] }
 0x136   : > { %v568_v54 = vmax.f32 %v552_v27, %v560_v51  ;;  %v1643_v51 = vld [vmem:[%s3062_s3 + $0xf0] sm:$0xff] }
 0x137   : > { %v1933_v56 = vpop.f32.mrb[26].mxu0  ;;  %v567_v57 = vmax.f32 %v551_v29, %v559_v53  ;;  %v1646_v29 = vld [vmem:[%s3062_s3 + $0x100] sm:$0xff] }
 0x138   : > { %v562_v58 = vmax.f32 %v1921_v44, %v1933_v56  ;;  %v522_v60 = vpop.f32.mrb[27].mxu0  ;;  %v583_v4 = vadd.f32 %v1619_v55, %v568_v54  ;;  %v1680_v54 = vld [vmem:[%s3062_s3 + $0x200] sm:$0xff]  ;;  %v2219_v56 = vpack.c.bf16 %v1644_v52, %v1643_v51  ;;  %v1631_v51 = vld [vmem:[%s3062_s3 + $0x90] sm:$0xff]  ;;  %v1632_v52 = vld [vmem:[%s3062_s3 + $0x98] sm:$0xff] }
 0x139   : > { %v561_v61 = vmax.f32 %v482_v45, %v522_v60  ;;  %v582_v62 = vadd.f32 %v1619_v55, %v567_v57  ;;  %v1641_v45 = vld [vmem:[%s3062_s3 + $0xe0] sm:$0xff] }
 0x13a   : > { %v570_v63 = vmax.f32 %v554_v31, %v562_v58  ;;  %v591_v11 = vmax.f32 %v583_v4, 0.0  ;;  %v1637_v31 = vld [vmem:[%s3062_s3 + $0xc0] sm:$0xff]  ;;  %v1655_v58 = vld [vmem:[%s3062_s3 + $0x148] sm:$0xff]  ;;  %v1657_v4 = vld [vmem:[%s3062_s3 + $0x158] sm:$0xff] }
 0x13b   : > { %v569_v0 = vmax.f32 %v553_v33, %v561_v61  ;;  %v1936_v1 = vpop.f32.mrb[28].mxu0  ;;  %v590_v2 = vmax.f32 %v582_v62, 0.0  ;;  %v2282_v33 = vpack.c.bf16 %v1647_v30, %v1646_v29  ;;  %v1654_v57 = vld [vmem:[%s3062_s3 + $0x140] sm:$0xff]  ;;  %v1682_v62 = vld [vmem:[%s3062_s3 + $0x210] sm:$0xff] }
 0x13c   : > { %v564_v5 = vmax.f32 %v1924_v46, %v1936_v1  ;;  %v532_v6 = vpop.f32.mrb[29].mxu0  ;;  %v585_v19 = vadd.f32 %v1619_v55, %v570_v63  ;;  %v1642_v46 = vld [vmem:[%s3062_s3 + $0xe8] sm:$0xff]  ;;  %v1683_v63 = vld [vmem:[%s3062_s3 + $0x218] sm:$0xff]  ;;  %v1677_v30 = vld [vmem:[%s3062_s3 + $0x1f0] sm:$0xff] }
 0x13d   : > { %v563_v7 = vmax.f32 %v492_v47, %v532_v6  ;;  %598 = vxpose.xlu0.b32.start [1/8] (short) (narrow) %v590_v2, 16  ;;  %v584_v12 = vadd.f32 %v1619_v55, %v569_v0  ;;  %v2288_v47 = vpack.c.bf16 %v1651_v43, %v1650_v42  ;;  %v2216_v50 = vpack.c.bf16 %v1642_v46, %v1641_v45  ;;  %v1656_v2 = vld [vmem:[%s3062_s3 + $0x150] sm:$0xff]  ;;  %v1684_v6 = vld [vmem:[%s3062_s3 + $0x220] sm:$0xff]  ;;  %v1693_v42 = vld [vmem:[%s3062_s3 + $0x268] sm:$0xff] }
 0x13e   : > { %v572_v8 = vmax.f32 %v556_v35, %v564_v5  ;;  %v593_v20 = vmax.f32 %v585_v19, 0.0  ;;  %v1649_v35 = vld [vmem:[%s3062_s3 + $0x118] sm:$0xff]  ;;  %v2222_v0 = vpack.c.bf16 %v1655_v58, %v1654_v57  ;;  %v2309_v5 = vpack.c.bf16 %v1683_v63, %v1682_v62  ;;  %v1671_v19 = vld [vmem:[%s3062_s3 + $0x1c0] sm:$0xff]  ;;  %v1635_v57 = vld [vmem:[%s3062_s3 + $0xb0] sm:$0xff] }
 0x13f   : > { %v571_v9 = vmax.f32 %v555_v37, %v563_v7  ;;  %v1939_v10 = vpop.f32.mrb[30].mxu0  ;;  %v592_v18 = vmax.f32 %v584_v12, 0.0  ;;  %v2210_v37 = vpack.c.bf16 %v1638_v32, %v1637_v31  ;;  %v1685_v7 = vld [vmem:[%s3062_s3 + $0x228] sm:$0xff]  ;;  %v1686_v12 = vld [vmem:[%s3062_s3 + $0x230] sm:$0xff]  ;;  %v1678_v31 = vld [vmem:[%s3062_s3 + $0x1f8] sm:$0xff] }
 0x140   : > { %v566_v13 = vmax.f32 %v1927_v48, %v1939_v10  ;;  %v542_v14 = vpop.f32.mrb[31].mxu0  ;;  %v587_v23 = vadd.f32 %v1619_v55, %v572_v8  ;;  %v1652_v48 = vld [vmem:[%s3062_s3 + $0x130] sm:$0xff]  ;;  %v2225_v8 = vpack.c.bf16 %v1657_v4, %v1656_v2  ;;  %v1659_v10 = vld [vmem:[%s3062_s3 + $0x168] sm:$0xff]  ;;  %v2243_v32 = vpack.c.bf16 %v1678_v31, %v1677_v30  ;;  %v1695_v45 = vld [vmem:[%s3062_s3 + $0x278] sm:$0xff] }
 0x141   : > { %v565_v15 = vmax.f32 %v502_v49, %v542_v14  ;;  %599 = vxpose.xlu0.b32.cont [2/8] (short) (narrow) %v591_v11, 16  ;;  %v586_v21 = vadd.f32 %v1619_v55, %v571_v9  ;;  %v1653_v49 = vld [vmem:[%s3062_s3 + $0x138] sm:$0xff]  ;;  %v1658_v9 = vld [vmem:[%s3062_s3 + $0x160] sm:$0xff]  ;;  %v2312_v11 = vpack.c.bf16 %v1685_v7, %v1684_v6  ;;  %v1664_v62 = vld [vmem:[%s3062_s3 + $0x188] sm:$0xff] }
 0x142   : > { %v574_v16 = vmax.f32 %v558_v39, %v566_v13  ;;  %v595_v24 = vmax.f32 %v587_v23, 0.0  ;;  %v1639_v39 = vld [vmem:[%s3062_s3 + $0xd0] sm:$0xff]  ;;  %v2291_v53 = vpack.c.bf16 %v1653_v49, %v1652_v48  ;;  %v1687_v13 = vld [vmem:[%s3062_s3 + $0x238] sm:$0xff]  ;;  %v2228_v14 = vpack.c.bf16 %v1659_v10, %v1658_v9  ;;  %v1630_v48 = vld [vmem:[%s3062_s3 + $0x88] sm:$0xff] }
 0x143   : > { %v573_v17 = vmax.f32 %v557_v41, %v565_v15  ;;  %v594_v22 = vmax.f32 %v586_v21, 0.0  ;;  %v2285_v41 = vpack.c.bf16 %v1649_v35, %v1648_v34  ;;  %v2213_v44 = vpack.c.bf16 %v1640_v40, %v1639_v39  ;;  %v1660_v15 = vld [vmem:[%s3062_s3 + $0x170] sm:$0xff]  ;;  %v1689_v34 = vld [vmem:[%s3062_s3 + $0x248] sm:$0xff]  ;;  %v1691_v39 = vld [vmem:[%s3062_s3 + $0x258] sm:$0xff] }
 0x144   : > { %v589_v27 = vadd.f32 %v1619_v55, %v574_v16  ;;  %v1661_v16 = vld [vmem:[%s3062_s3 + $0x178] sm:$0xff]  ;;  %v1668_v6 = vld [vmem:[%s3062_s3 + $0x1a8] sm:$0xff]  ;;  %v1471_v31 = vld [vmem:[%s3064_s5 + $0x70] sm:$0xff] }
 0x145   : > { %600 = vxpose.xlu0.b32.cont [3/8] (short) (narrow) %v592_v18, 16  ;;  %v588_v25 = vadd.f32 %v1619_v55, %v573_v17  ;;  %v1681_v55 = vld [vmem:[%s3062_s3 + $0x208] sm:$0xff]  ;;  %v2315_v17 = vpack.c.bf16 %v1687_v13, %v1686_v12  ;;  %v2231_v18 = vpack.c.bf16 %v1661_v16, %v1660_v15  ;;  %v1636_v58 = vld [vmem:[%s3062_s3 + $0xb8] sm:$0xff]  ;;  %v1457_v12 = vld [vmem:[%s3064_s5] sm:$0xff] }
 0x146   : > { %v597_v28 = vmax.f32 %v589_v27, 0.0  ;;  %v2306_v60 = vpack.c.bf16 %v1681_v55, %v1680_v54  ;;  %v1675_v27 = vld [vmem:[%s3062_s3 + $0x1e0] sm:$0xff]  ;;  %v1634_v55 = vld [vmem:[%s3062_s3 + $0xa8] sm:$0xff]  ;;  %v1666_v2 = vld [vmem:[%s3062_s3 + $0x198] sm:$0xff] }
 0x147   : > { %v596_v26 = vmax.f32 %v588_v25, 0.0  ;;  %v1674_v25 = vld [vmem:[%s3062_s3 + $0x1d8] sm:$0xff]  ;;  %v1633_v54 = vld [vmem:[%s3062_s3 + $0xa0] sm:$0xff]  ;;  %v1458_v13 = vld [vmem:[%s3064_s5 + $0x8] sm:$0xff] }
 0x148   : > { %v1670_v9 = vld [vmem:[%s3062_s3 + $0x1b8] sm:$0xff]  ;;  %v1461_v16 = vld [vmem:[%s3064_s5 + $0x20] sm:$0xff] }
 0x149   : > { %601 = vxpose.xlu0.b32.cont [4/8] (short) (narrow) %v593_v20, 16  ;;  %v1672_v20 = vld [vmem:[%s3062_s3 + $0x1c8] sm:$0xff] }
 0x14d   : > { %602 = vxpose.xlu0.b32.cont [5/8] (short) (narrow) %v594_v22, 16  ;;  %v2234_v22 = vpack.c.bf16 %v1672_v20, %v1671_v19  ;;  %v1464_v20 = vld [vmem:[%s3064_s5 + $0x38] sm:$0xff] }
 0x151   : > { %603 = vxpose.xlu0.b32.cont [6/8] (short) (narrow) %v595_v24, 16  ;;  %v1673_v24 = vld [vmem:[%s3062_s3 + $0x1d0] sm:$0xff] }
 0x155   : > { %604 = vxpose.xlu0.b32.cont [7/8] (short) (narrow) %v596_v26, 16  ;;  %v2237_v26 = vpack.c.bf16 %v1674_v25, %v1673_v24  ;;  %v1467_v25 = vld [vmem:[%s3064_s5 + $0x50] sm:$0xff] }
 0x159   : > { %605 = vxpose.xlu0.b32.end [8/8] (short) (narrow) %v597_v28, 16  ;;  %v1676_v28 = vld [vmem:[%s3062_s3 + $0x1e8] sm:$0xff] }
 0x15a   : > { %v2240_v29 = vpack.c.bf16 %v1676_v28, %v1675_v27  ;;  %v1469_v28 = vld [vmem:[%s3064_s5 + $0x60] sm:$0xff] }
 0x1bd   : > { %v2708_v36 = vpop.trf.xlu0 }
 0x1be   : > { %2052 = vmatmul.mubr.msk.f32.vlgmr.msra.gmra.mrb[32].mxu0 %vm649_vm1, %v2708_v36  ;;  %v648_v38 = vrot.slane %v2708_v36, 1  ;;  %v1232_v61 = vrot.slane %v2708_v36, 4  ;;  %v740_v1 = vrot.slane %v2708_v36, 3  ;;  %v831_v23 = vrot.slane %v2708_v36, 5 }
 0x1bf   : > { %2283 = vmatpush3.bf16.msra.mxu0 %v2282_v33  ;;  %2089 = vmatprep.mubr.msk.f32.mxu0 %vm2448_vm0, %v2449_v3  ;;  %v1688_v33 = vld [vmem:[%s3062_s3 + $0x240] sm:$0xff] }
 0x1c0   : > { %1957 = vmatmul.mubr.msk.f32.vlgmr.msra.gmra.mrb[0].mxu1 %vm649_vm1, %v648_v38  ;;  %2284 = vmatprep.subr.bf16.mxu0 %v2447_v59  ;;  %v2246_v35 = vpack.c.bf16 %v1689_v34, %v1688_v33  ;;  %v1690_v38 = vld [vmem:[%s3062_s3 + $0x250] sm:$0xff] }
 0x1c1   : > { %2211 = vmatpush3.bf16.msra.mxu1 %v2210_v37  ;;  %1975 = vmatprep.mubr.msk.f32.mxu1 %vm2448_vm0, %v2449_v3  ;;  %v615_v21 = vpop.trf.xlu0  ;;  %v922_v37 = vrot.slane %v2708_v36, 7  ;;  %v2249_v40 = vpack.c.bf16 %v1691_v39, %v1690_v38 }
 0x1c2   : > { %2212 = vmatprep.subr.bf16.mxu1 %v2447_v59  ;;  %v1014_v49 = vrot.slane %v615_v21, 1 }
 0x1c3   : > { %2286 = vmatpush3.bf16.msra.mxu0 %v2285_v41  ;;  %v1692_v41 = vld [vmem:[%s3062_s3 + $0x260] sm:$0xff] }
 0x1c4   : > { %2287 = vmatprep.subr.bf16.mxu0 %v2447_v59  ;;  %v2252_v43 = vpack.c.bf16 %v1693_v42, %v1692_v41 }
 0x1c5   : > { %2214 = vmatpush3.bf16.msra.mxu1 %v2213_v44  ;;  %v1694_v44 = vld [vmem:[%s3062_s3 + $0x270] sm:$0xff] }
 0x1c6   : > { %2215 = vmatprep.subr.bf16.mxu1 %v2447_v59  ;;  %v2255_v46 = vpack.c.bf16 %v1695_v45, %v1694_v44 }
 0x1c7   : > { %2289 = vmatpush3.bf16.msra.mxu0 %v2288_v47  ;;  %v1629_v47 = vld [vmem:[%s3062_s3 + $0x80] sm:$0xff] }
 0x1c8   : > { %2290 = vmatprep.subr.bf16.mxu0 %v2447_v59 }
 0x1c9   : > { %2217 = vmatpush3.bf16.msra.mxu1 %v2216_v50  ;;  %v2270_v50 = vpack.c.bf16 %v1630_v48, %v1629_v47 }
 0x1ca   : > { %2218 = vmatprep.subr.bf16.mxu1 %v2447_v59 }
 0x1cb   : > { %2292 = vmatpush3.bf16.msra.mxu0 %v2291_v53  ;;  %v2273_v53 = vpack.c.bf16 %v1632_v52, %v1631_v51 }
 0x1cc   : > { %2305 = vmatprep.subr.bf16.mxu0 %v2447_v59 }
 0x1cd   : > { %2220 = vmatpush3.bf16.msra.mxu1 %v2219_v56  ;;  %v2276_v56 = vpack.c.bf16 %v1634_v55, %v1633_v54 }
 0x1ce   : > { %2090 = vmatmul.mubr.msk.f32.vlgmr.msra.gmra.mrb[34].mxu0 %vm649_vm1, %v1232_v61  ;;  %2221 = vmatprep.subr.bf16.mxu1 %v2447_v59  ;;  %v1663_v61 = vld [vmem:[%s3062_s3 + $0x180] sm:$0xff] }
 0x1cf   : > { %2307 = vmatpush3.bf16.msra.mxu0 %v2306_v60  ;;  %2127 = vmatprep.mubr.msk.f32.mxu0 %vm2448_vm0, %v2449_v3  ;;  %v2279_v60 = vpack.c.bf16 %v1636_v58, %v1635_v57  ;;  %v2294_v63 = vpack.c.bf16 %v1664_v62, %v1663_v61 }
 0x1d0   : > { %1976 = vmatmul.mubr.msk.f32.vlgmr.msra.gmra.mrb[2].mxu1 %vm649_vm1, %v740_v1  ;;  %2308 = vmatprep.subr.bf16.mxu0 %v2447_v59  ;;  %v1665_v1 = vld [vmem:[%s3062_s3 + $0x190] sm:$0xff] }
 0x1d1   : > { %2223 = vmatpush3.bf16.msra.mxu1 %v2222_v0  ;;  %1994 = vmatprep.mubr.msk.f32.mxu1 %vm2448_vm0, %v2449_v3  ;;  %v1159_v0 = vrot.slane %v2708_v36, 2  ;;  %v2297_v4 = vpack.c.bf16 %v1666_v2, %v1665_v1 }
 0x1d2   : > { %2224 = vmatprep.subr.bf16.mxu1 %v2447_v59 }
 0x1d3   : > { %2310 = vmatpush3.bf16.msra.mxu0 %v2309_v5  ;;  %v1667_v5 = vld [vmem:[%s3062_s3 + $0x1a0] sm:$0xff] }
 0x1d4   : > { %2311 = vmatprep.subr.bf16.mxu0 %v2447_v59  ;;  %v2300_v7 = vpack.c.bf16 %v1668_v6, %v1667_v5 }
 0x1d5   : > { %2226 = vmatpush3.bf16.msra.mxu1 %v2225_v8  ;;  %v1669_v8 = vld [vmem:[%s3062_s3 + $0x1b0] sm:$0xff] }
 0x1d6   : > { %2227 = vmatprep.subr.bf16.mxu1 %v2447_v59  ;;  %v2303_v10 = vpack.c.bf16 %v1670_v9, %v1669_v8 }
 0x1d7   : > { %2313 = vmatpush3.bf16.msra.mxu0 %v2312_v11  ;;  %v1305_v11 = vrot.slane %v2708_v36, 6  ;;  %v1459_v36 = vld [vmem:[%s3064_s5 + $0x10] sm:$0xff] }
 0x1d8   : > { %2314 = vmatprep.subr.bf16.mxu0 %v2447_v59 }
 0x1d9   : > { %2229 = vmatpush3.bf16.msra.mxu1 %v2228_v14  ;;  %v2318_v14 = vpack.c.bf16 %v1458_v13, %v1457_v12 }
 0x1da   : > { %2230 = vmatprep.subr.bf16.mxu1 %v2447_v59 }
 0x1db   : > { %2316 = vmatpush3.bf16.msra.mxu0 %v2315_v17  ;;  %v1462_v17 = vld [vmem:[%s3064_s5 + $0x28] sm:$0xff] }
 0x1dc   : > { %v2324_v19 = vpack.c.bf16 %v1462_v17, %v1461_v16 }
 0x1dd   : > { %2232 = vmatpush3.bf16.msra.mxu1 %v2231_v18  ;;  %v1463_v18 = vld [vmem:[%s3064_s5 + $0x30] sm:$0xff] }
 0x1de   : > { %2233 = vmatprep.subr.bf16.mxu1 %v2447_v59  ;;  %2128 = vmatmul.mubr.msk.f32.vlgmr.msra.gmra.mrb[36].mxu0 %vm649_vm1, %v615_v21  ;;  %v2327_v21 = vpack.c.bf16 %v1464_v20, %v1463_v18 }
 0x1e0   : > { %1995 = vmatmul.mubr.msk.f32.vlgmr.msra.gmra.mrb[4].mxu1 %vm649_vm1, %v831_v23  ;;  %v1466_v23 = vld [vmem:[%s3064_s5 + $0x48] sm:$0xff] }
 0x1e1   : > { %2235 = vmatpush3.bf16.msra.mxu1 %v2234_v22  ;;  %2013 = vmatprep.mubr.msk.f32.mxu1 %vm2448_vm0, %v2449_v3  ;;  %v1465_v22 = vld [vmem:[%s3064_s5 + $0x40] sm:$0xff] }
 0x1e2   : > { %2236 = vmatprep.subr.bf16.mxu1 %v2447_v59  ;;  %v2330_v24 = vpack.c.bf16 %v1466_v23, %v1465_v22 }
 0x1e5   : > { %2238 = vmatpush3.bf16.msra.mxu1 %v2237_v26  ;;  %v1468_v26 = vld [vmem:[%s3064_s5 + $0x58] sm:$0xff] }
 0x1e6   : > { %2239 = vmatprep.subr.bf16.mxu1 %v2447_v59  ;;  %v2333_v27 = vpack.c.bf16 %v1468_v26, %v1467_v25 }
 0x1e9   : > { %2241 = vmatpush3.bf16.msra.mxu1 %v2240_v29  ;;  %v1470_v29 = vld [vmem:[%s3064_s5 + $0x68] sm:$0xff] }
 0x1ea   : > { %2242 = vmatprep.subr.bf16.mxu1 %v2447_v59  ;;  %v2336_v30 = vpack.c.bf16 %v1470_v29, %v1469_v28 }
 0x1ed   : > { %2244 = vmatpush3.bf16.msra.mxu1 %v2243_v32  ;;  %v1472_v32 = vld [vmem:[%s3064_s5 + $0x78] sm:$0xff] }
 0x1ee   : > { %2245 = vmatprep.subr.bf16.mxu1 %v2447_v59  ;;  %v2339_v33 = vpack.c.bf16 %v1472_v32, %v1471_v31 }
 0x1f0   : > { %2014 = vmatmul.mubr.msk.f32.vlgmr.msra.gmra.mrb[6].mxu1 %vm649_vm1, %v922_v37 }
 0x1f1   : > { %2247 = vmatpush3.bf16.msra.mxu1 %v2246_v35  ;;  %2032 = vmatprep.mubr.msk.f32.mxu1 %vm2448_vm0, %v2449_v3 }
 0x1f2   : > { %2248 = vmatprep.subr.bf16.mxu1 %v2447_v59 }
 0x1f5   : > { %2250 = vmatpush3.bf16.msra.mxu1 %v2249_v40 }
 0x1f6   : > { %2251 = vmatprep.subr.bf16.mxu1 %v2447_v59 }
 0x1f9   : > { %2253 = vmatpush3.bf16.msra.mxu1 %v2252_v43 }
 0x1fa   : > { %2254 = vmatprep.subr.bf16.mxu1 %v2447_v59 }
 0x1fd   : > { %2256 = vmatpush3.bf16.msra.mxu1 %v2255_v46 }
 0x1fe   : > { %2269 = vmatprep.subr.bf16.mxu1 %v2447_v59 }
 0x200   : > { %2033 = vmatmul.mubr.msk.f32.vlgmr.msra.gmra.mrb[8].mxu1 %vm649_vm1, %v1014_v49 }
 0x201   : > { %2271 = vmatpush3.bf16.msra.mxu1 %v2270_v50  ;;  %2070 = vmatprep.mubr.msk.f32.mxu1 %vm2448_vm0, %v2449_v3 }
 0x202   : > { %2272 = vmatprep.subr.bf16.mxu1 %v2447_v59 }
 0x205   : > { %2274 = vmatpush3.bf16.msra.mxu1 %v2273_v53 }
 0x206   : > { %2275 = vmatprep.subr.bf16.mxu1 %v2447_v59 }
 0x209   : > { %2277 = vmatpush3.bf16.msra.mxu1 %v2276_v56 }
 0x20a   : > { %2278 = vmatprep.subr.bf16.mxu1 %v2447_v59 }
 0x20d   : > { %2280 = vmatpush3.bf16.msra.mxu1 %v2279_v60 }
 0x20e   : > { %2293 = vmatprep.subr.bf16.mxu1 %v2447_v59 }
 0x210   : > { %2071 = vmatmul.mubr.msk.f32.vlgmr.msra.gmra.mrb[10].mxu1 %vm649_vm1, %v1159_v0 }
 0x211   : > { %2295 = vmatpush3.bf16.msra.mxu1 %v2294_v63  ;;  %2108 = vmatprep.mubr.msk.f32.mxu1 %vm2448_vm0, %v2449_v3  ;;  %v1454_v63 = vld [vmem:[%s3063_s4] sm:$0x1] }
 0x212   : > { %2296 = vmatprep.subr.bf16.mxu1 %v2447_v59 }
 0x215   : > { %2298 = vmatpush3.bf16.msra.mxu1 %v2297_v4  ;;  %v1473_v4 = vld [vmem:[%s3065_s6] sm:$0x1] }
 0x216   : > { %2299 = vmatprep.subr.bf16.mxu1 %v2447_v59 }
 0x219   : > { %2301 = vmatpush3.bf16.msra.mxu1 %v2300_v7 }
 0x21a   : > { %2302 = vmatprep.subr.bf16.mxu1 %v2447_v59 }
 0x21d   : > { %2304 = vmatpush3.bf16.msra.mxu1 %v2303_v10 }
 0x21e   : > { %2317 = vmatprep.subr.bf16.mxu1 %v2447_v59 }
 0x220   : > { %2109 = vmatmul.mubr.msk.f32.vlgmr.msra.gmra.mrb[12].mxu1 %vm649_vm1, %v1305_v11 }
 0x221   : > { %2162 = vmatprep.mubr.msk.f32.mxu1 %vm2448_vm0, %v2449_v3  ;;  %2319 = vmatpush3.bf16.msra.mxu1 %v2318_v14  ;;  %v1460_v3 = vld [vmem:[%s3064_s5 + $0x18] sm:$0xff] }
 0x222   : > { %2320 = vmatprep.subr.bf16.mxu1 %v2447_v59  ;;  %v2321_v15 = vpack.c.bf16 %v1460_v3, %v1459_v36 }
 0x225   : > { %2322 = vmatpush3.bf16.msra.mxu1 %v2321_v15 }
 0x226   : > { %2323 = vmatprep.subr.bf16.mxu1 %v2447_v59 }
 0x229   : > { %2325 = vmatpush3.bf16.msra.mxu1 %v2324_v19 }
 0x22a   : > { %2326 = vmatprep.subr.bf16.mxu1 %v2447_v59 }
 0x22d   : > { %2328 = vmatpush3.bf16.msra.mxu1 %v2327_v21 }
 0x22e   : > { %2329 = vmatprep.subr.bf16.mxu1 %v2447_v59 }
 0x231   : > { %2331 = vmatpush3.bf16.msra.mxu1 %v2330_v24 }
 0x232   : > { %2332 = vmatprep.subr.bf16.mxu1 %v2447_v59 }
 0x235   : > { %2334 = vmatpush3.bf16.msra.mxu1 %v2333_v27 }
 0x236   : > { %2335 = vmatprep.subr.bf16.mxu1 %v2447_v59 }
 0x239   : > { %2337 = vmatpush3.bf16.msra.mxu1 %v2336_v30 }
 0x23a   : > { %2338 = vmatprep.subr.bf16.mxu1 %v2447_v59 }
 0x23d   : > { %2340 = vmatpush3.bf16.msra.mxu1 %v2339_v33 }
 0x291   : > { %v1155_v34 = vpop.f32.mrb[32].mxu0 }
 0x292   : > { %v2053_v35 = vpop.f32.mrb[33].mxu0 }
 0x293   : > { %v718_v37 = vpop.f32.mrb[0].mxu1 }
 0x294   : > { %v1156_v38 = vadd.f32 %v1155_v34, %v718_v37  ;;  %v1958_v39 = vpop.f32.mrb[1].mxu1 }
 0x2a1   : > { %v1301_v40 = vpop.f32.mrb[34].mxu0 }
 0x2a2   : > { %v2091_v41 = vpop.f32.mrb[35].mxu0 }
 0x2a3   : > { %v809_v42 = vpop.f32.mrb[2].mxu1 }
 0x2a4   : > { %v1977_v43 = vpop.f32.mrb[3].mxu1 }
 0x2b1   : > { %v1446_v59 = vpop.f32.mrb[36].mxu0 }
 0x2b2   : > { %v2129_v44 = vpop.f32.mrb[37].mxu0 }
 0x2b3   : > { %v900_v45 = vpop.f32.mrb[4].mxu1 }
 0x2b4   : > { %v1302_v46 = vadd.f32 %v1301_v40, %v900_v45  ;;  %v1996_v47 = vpop.f32.mrb[5].mxu1 }
 0x2c3   : > { %v991_v48 = vpop.f32.mrb[6].mxu1 }
 0x2c4   : > { %v2015_v49 = vpop.f32.mrb[7].mxu1 }
 0x2d3   : > { %v1083_v50 = vpop.f32.mrb[8].mxu1 }
 0x2d4   : > { %v1447_v51 = vadd.f32 %v1446_v59, %v1083_v50  ;;  %v2034_v52 = vpop.f32.mrb[9].mxu1 }
 0x2e3   : > { %v1228_v53 = vpop.f32.mrb[10].mxu1 }
 0x2e4   : > { %v1229_v54 = vadd.f32 %v1228_v53, %v809_v42  ;;  %v2072_v55 = vpop.f32.mrb[11].mxu1 }
 0x2e6   : > { %v1450_v56 = vadd.f32 %v1229_v54, %v1156_v38 }
 0x2f3   : > { %v1374_v57 = vpop.f32.mrb[12].mxu1 }
 0x2f4   : > { %v1375_v58 = vadd.f32 %v1374_v57, %v991_v48  ;;  %v2110_v60 = vpop.f32.mrb[13].mxu1 }
 0x2f6   : > { %v1451_v61 = vadd.f32 %v1375_v58, %v1302_v46 }
 0x2f8   : > { %v1452_v62 = vadd.f32 %v1451_v61, %v1450_v56 }
 0x2fa   : > { %v1453_v0 = vadd.f32 %v1452_v62, %v1447_v51 }
 0x2fc   : > { %v1455_v1 = vadd.f32 %v1454_v63, %v1453_v0 }
 0x2fe   : > { %v1456_v2 = vmax.f32 %v1455_v1, 0.0 }
 0x300   : > { %2163 = vmatmul.mubr.f32.vlgmr.msra.gmra.mrb[14].mxu1 %v1456_v2 }
 0x3d3   : > { %v1540_v5 = vpop.f32.mrb[14].mxu1 }
 0x3d4   : > { %v1541_v6 = vadd.f32 %v1540_v5, %v1473_v4  ;;  %v2164_v7 = vpop.f32.mrb[15].mxu1 }
 0x3d6   : > { %1544 = vst [vmem:[%s271_s13] sm:$0x1] %v1541_v6 }
 0x3d7   : > { %2396 = shalt.err (!%p2393_p3)
}
 0x3d8   : > { %s2397_s22 = scalar_lea.hbm %s3017_s16, 16  ;;  %s2401_s8 = scalar_lea.hbm %s3066_s7, 32 }
 0x3d9   : > { %p2398_p4 = scmp.ne.s32.totalorder %s3017_s16, %s2397_s22  ;;  %p2402_p9 = scmp.lt.u32.totalorder %s3017_s16, %s3066_s7 }
 0x3da   : > { %p2403_p10 = scmp.lt.u32.totalorder %s2401_s8, %s2397_s22  ;;  %p2405_p12 = scmp.lt.u32.totalorder %s2397_s22, %s3017_s16 }
 0x3db   : > { %p2399_p7 = pnand %p2398_p4, %p2529_p5 }
 0x3dc   : > { %p2404_p11 = por %p2403_p10, %p2402_p9 }
 0x3dd   : > { %p2400_p8 = pneg %p2399_p7 }
 0x3de   : > { %p2406_p13 = por %p2405_p12, %p2404_p11 }
 0x3e0   : > { %p2407_p0 = pnand %p2406_p13, %p2400_p8 }
 0x3e2   : > { %2410 = shalt.err (!%p2407_p0)
}
 0x3e3   : > { %2341 = dma.vmem_to_hbm [thread:$0]  (%p2529_p5), %s3019_s14, 16, %s3017_s16, %s1546_s17  }
 0x3e4 PF: > { %p2347_p1 = scmp.ge.s32.totalorder %s2445_s27, 2  ;;  %s1570_s20 = sand.u32 1, %s2433_s24  }
 0x3e5   : > { %s1571_s15 = scalar_lea.sflag [#allocation3], %s1570_s20 }
 0x3e6   : > { %p2344_p2 = pnand %p2347_p1, %p2533_p6 }
 0x3e8   : > { %2428 = dma.done.wait (!%p2344_p2), %s1571_s15, 16  }
 0x3e9   : > { %2430 = vsyncadd (!%p2344_p2), %s1571_s15, 4294967280  ;;  %p17_p3 = scmp.ge.s32.totalorder %s2516_s30, 4   ;;  %s3069_s24 = smov %s2437_s25 }
 0x3ea   : > { %s3070_s25 = smov %s2441_s26  ;;  %s3071_s26 = smov %s2527_s10 }
 0x3eb   : > { %s3072_s27 = smov %s2516_s30  ;;  %19 = sbr.rel (!%p17_p3) target bundleno = 3 (0x3), region = 92 }
 0x3f2   :  { %1575 = vsyncpa [#allocation3], 1 }
 0x3f3   :  { %1577 = vsyncpa [#allocation3 + $0x1], 1 }

</bundles_post_ra>
